<compile_context>
chip_gen: v5e
topology: v5e:2x2
jax: 0.10.0
libtpu: 0.0.40
codegen_flags: <defaults>
</compile_context>

<pallas_src>
import functools

import jax
import jax.numpy as jnp
from jax import lax
from jax.experimental import pallas as pl
from jax.experimental.pallas import tpu as pltpu

HIDDEN = 10
# Packed parameter layout (length 41):
#   [0:10)   w1[0, :]   (weight applied to input feature 0)
#   [10:20)  w1[1, :]   (weight applied to input feature 1)
#   [20:30)  b1
#   [30:40)  w2
#   [40]     b2
N_PARAMS = 4 * HIDDEN + 1


def _mlp_kernel(params_ref, x0_ref, x1_ref, o_ref, *, chunk):
    # params_ref: SMEM f32[41] (scalar prefetch)
    # x0_ref, x1_ref, o_ref: VMEM f32[TILE_R, C]
    # Hoist all scalar reads once per grid step (scalar slots; splat at use).
    w10 = [params_ref[j] for j in range(HIDDEN)]
    w11 = [params_ref[HIDDEN + j] for j in range(HIDDEN)]
    b1s = [params_ref[2 * HIDDEN + j] for j in range(HIDDEN)]
    w2s = [params_ref[3 * HIDDEN + j] for j in range(HIDDEN)]
    b2s = params_ref[4 * HIDDEN]

    tile_r = x0_ref.shape[0]
    n_chunks = tile_r // chunk

    def body(c, carry):
        r = pl.multiple_of(c * chunk, chunk)
        x0 = x0_ref[pl.ds(r, chunk), :]
        x1 = x1_ref[pl.ds(r, chunk), :]
        # Start the accumulator at b2 (saves one add per element vs zeros+b2).
        acc = jnp.broadcast_to(b2s, x0.shape).astype(jnp.float32)
        # Fully unrolled over the 10 hidden units: pure VPU multiply-add + relu.
        for j in range(HIDDEN):
            h = jnp.maximum(x0 * w10[j] + x1 * w11[j] + b1s[j], 0.0)
            acc = acc + h * w2s[j]
        o_ref[pl.ds(r, chunk), :] = acc
        return carry

    unroll = 2 if n_chunks >= 2 else 1
    lax.fori_loop(0, n_chunks, body, 0, unroll=unroll)


def _choose_layout(batch):
    """Pick (lanes, rows_pad, tile_r, chunk) for a dense (R, C) slab layout."""
    lanes = 512 if batch >= 8 * 512 else 128
    rows = pl.cdiv(batch, lanes)
    rows8 = pl.cdiv(rows, 8) * 8                # sublane-align row count
    tile_r = min(1024, rows8)                   # up to 1024x512 f32 = 2 MB/slab
    # Prefer >= 2 grid steps when there is enough work (v7x megacore).
    if rows8 // tile_r < 2 and rows8 >= 16:
        tile_r = pl.cdiv(rows8 // 2, 8) * 8
    rows_pad = pl.cdiv(rows8, tile_r) * tile_r
    chunk = 16 if tile_r % 16 == 0 else 8       # register-resident chunk
    return lanes, rows_pad, tile_r, chunk


@jax.jit
def vehicle_model_forward(x, w1, b1, w2, b2):
    """Fused MLP forward. x: (B, 2) f32 -> (B, 1) f32.

    w1: (2, 10), b1: (10,), w2: (10,), b2: (1,)  (transposed vs. PyTorch).
    """
    B = x.shape[0]
    lanes, rows_pad, tile_r, chunk = _choose_layout(B)
    b_pad = rows_pad * lanes
    n_tiles = rows_pad // tile_r

    # Feature-split, pad, and lay out as dense (rows_pad, lanes) slabs.
    # TODO(synk): if the producer/consumer can adopt the (R, C) layout natively,
    # these pad/reshape relayouts (and the final slice) can be dropped entirely.
    x0 = jnp.pad(x[:, 0], (0, b_pad - B)).reshape(rows_pad, lanes)
    x1 = jnp.pad(x[:, 1], (0, b_pad - B)).reshape(rows_pad, lanes)

    # Single small packed parameter vector -> SMEM via scalar prefetch.
    params = jnp.concatenate(
        [w1[0, :], w1[1, :], b1.reshape(-1), w2.reshape(-1), b2.reshape(-1)]
    ).astype(jnp.float32)

    out = pl.pallas_call(
        functools.partial(_mlp_kernel, chunk=chunk),
        out_shape=jax.ShapeDtypeStruct((rows_pad, lanes), jnp.float32),
        grid_spec=pltpu.PrefetchScalarGridSpec(
            num_scalar_prefetch=1,
            grid=(n_tiles,),
            in_specs=[
                pl.BlockSpec((tile_r, lanes), lambda i, p: (i, 0)),
                pl.BlockSpec((tile_r, lanes), lambda i, p: (i, 0)),
            ],
            out_specs=pl.BlockSpec((tile_r, lanes), lambda i, p: (i, 0)),
        ),
        compiler_params=pltpu.CompilerParams(
            dimension_semantics=("parallel",),
            vmem_limit_bytes=48 * 1024 * 1024,
        ),
        cost_estimate=pl.CostEstimate(
            flops=70 * b_pad,            # ~70 VPU ops per element
            transcendentals=0,
            bytes_accessed=12 * b_pad,   # 8 B in + 4 B out per element
        ),
    )(params, x0, x1)

    return out.reshape(-1)[:B].reshape(B, 1)


def init_params(key):
    """Deterministic init mimicking PyTorch nn.Linear (uniform +/- 1/sqrt(fan_in))."""
    k1, k2, k3, k4 = jax.random.split(key, 4)
    bound1 = 1.0 / jnp.sqrt(2.0)    # fan_in = 2
    bound2 = 1.0 / jnp.sqrt(10.0)   # fan_in = 10
    # Stored as (in, out) so forward is x @ w (transpose of PyTorch layout).
    w1 = jax.random.uniform(k1, (2, HIDDEN), jnp.float32, -bound1, bound1)
    b1 = jax.random.uniform(k2, (HIDDEN,), jnp.float32, -bound1, bound1)
    w2 = jax.random.uniform(k3, (HIDDEN,), jnp.float32, -bound2, bound2)
    b2 = jax.random.uniform(k4, (1,), jnp.float32, -bound2, bound2)
    return w1, b1, w2, b2


def reference_forward(x, w1, b1, w2, b2):
    h = jnp.maximum(x @ w1 + b1[None, :], 0.0)
    return h @ w2[:, None] + b2[None, :]


if __name__ == "__main__":
    key = jax.random.PRNGKey(0)
    kx, kp = jax.random.split(key)

    B = 8  # small batch
    x = jax.random.normal(kx, (B, 2), jnp.float32)
    w1, b1, w2, b2 = init_params(kp)

    out = vehicle_model_forward(x, w1, b1, w2, b2)
    out = jax.block_until_ready(out)

    ref = reference_forward(x, w1, b1, w2, b2)
    assert out.shape == (B, 1), out.shape
    assert jnp.allclose(out, ref, atol=1e-5, rtol=1e-5), (out, ref)

    print("KERNEL_OK")
</pallas_src>

<mosaic_0001>
module attributes {stable_mosaic.version = 11 : i64} {
  func.func @_mlp_kernel(%arg0: i32, %arg1: memref<41xf32, #tpu.memory_space<smem>>, %arg2: memref<8x128xf32, #tpu.memory_space<vmem>>, %arg3: memref<8x128xf32, #tpu.memory_space<vmem>>, %arg4: memref<8x128xf32, #tpu.memory_space<vmem>>) attributes {dimension_semantics = [#tpu.dimension_semantics<parallel>], iteration_bounds = array<i64: 1>, scalar_prefetch = 1 : i64, scratch_operands = 0 : i64, tpu.core_type = #tpu.core_type<tc>, window_params = [{transform_indices = @transform_0, window_bounds = array<i64: 8, 128>}, {transform_indices = @transform_1, window_bounds = array<i64: 8, 128>}, {transform_indices = @transform_2, window_bounds = array<i64: 8, 128>}]} {
    %c0 = arith.constant 0 : index
    %0 = memref.load %arg1[%c0] : memref<41xf32, #tpu.memory_space<smem>>
    %c1 = arith.constant 1 : index
    %1 = memref.load %arg1[%c1] : memref<41xf32, #tpu.memory_space<smem>>
    %c2 = arith.constant 2 : index
    %2 = memref.load %arg1[%c2] : memref<41xf32, #tpu.memory_space<smem>>
    %c3 = arith.constant 3 : index
    %3 = memref.load %arg1[%c3] : memref<41xf32, #tpu.memory_space<smem>>
    %c4 = arith.constant 4 : index
    %4 = memref.load %arg1[%c4] : memref<41xf32, #tpu.memory_space<smem>>
    %c5 = arith.constant 5 : index
    %5 = memref.load %arg1[%c5] : memref<41xf32, #tpu.memory_space<smem>>
    %c6 = arith.constant 6 : index
    %6 = memref.load %arg1[%c6] : memref<41xf32, #tpu.memory_space<smem>>
    %c7 = arith.constant 7 : index
    %7 = memref.load %arg1[%c7] : memref<41xf32, #tpu.memory_space<smem>>
    %c8 = arith.constant 8 : index
    %8 = memref.load %arg1[%c8] : memref<41xf32, #tpu.memory_space<smem>>
    %c9 = arith.constant 9 : index
    %9 = memref.load %arg1[%c9] : memref<41xf32, #tpu.memory_space<smem>>
    %c10 = arith.constant 10 : index
    %10 = memref.load %arg1[%c10] : memref<41xf32, #tpu.memory_space<smem>>
    %c11 = arith.constant 11 : index
    %11 = memref.load %arg1[%c11] : memref<41xf32, #tpu.memory_space<smem>>
    %c12 = arith.constant 12 : index
    %12 = memref.load %arg1[%c12] : memref<41xf32, #tpu.memory_space<smem>>
    %c13 = arith.constant 13 : index
    %13 = memref.load %arg1[%c13] : memref<41xf32, #tpu.memory_space<smem>>
    %c14 = arith.constant 14 : index
    %14 = memref.load %arg1[%c14] : memref<41xf32, #tpu.memory_space<smem>>
    %c15 = arith.constant 15 : index
    %15 = memref.load %arg1[%c15] : memref<41xf32, #tpu.memory_space<smem>>
    %c16 = arith.constant 16 : index
    %16 = memref.load %arg1[%c16] : memref<41xf32, #tpu.memory_space<smem>>
    %c17 = arith.constant 17 : index
    %17 = memref.load %arg1[%c17] : memref<41xf32, #tpu.memory_space<smem>>
    %c18 = arith.constant 18 : index
    %18 = memref.load %arg1[%c18] : memref<41xf32, #tpu.memory_space<smem>>
    %c19 = arith.constant 19 : index
    %19 = memref.load %arg1[%c19] : memref<41xf32, #tpu.memory_space<smem>>
    %c20 = arith.constant 20 : index
    %20 = memref.load %arg1[%c20] : memref<41xf32, #tpu.memory_space<smem>>
    %c21 = arith.constant 21 : index
    %21 = memref.load %arg1[%c21] : memref<41xf32, #tpu.memory_space<smem>>
    %c22 = arith.constant 22 : index
    %22 = memref.load %arg1[%c22] : memref<41xf32, #tpu.memory_space<smem>>
    %c23 = arith.constant 23 : index
    %23 = memref.load %arg1[%c23] : memref<41xf32, #tpu.memory_space<smem>>
    %c24 = arith.constant 24 : index
    %24 = memref.load %arg1[%c24] : memref<41xf32, #tpu.memory_space<smem>>
    %c25 = arith.constant 25 : index
    %25 = memref.load %arg1[%c25] : memref<41xf32, #tpu.memory_space<smem>>
    %c26 = arith.constant 26 : index
    %26 = memref.load %arg1[%c26] : memref<41xf32, #tpu.memory_space<smem>>
    %c27 = arith.constant 27 : index
    %27 = memref.load %arg1[%c27] : memref<41xf32, #tpu.memory_space<smem>>
    %c28 = arith.constant 28 : index
    %28 = memref.load %arg1[%c28] : memref<41xf32, #tpu.memory_space<smem>>
    %c29 = arith.constant 29 : index
    %29 = memref.load %arg1[%c29] : memref<41xf32, #tpu.memory_space<smem>>
    %c30 = arith.constant 30 : index
    %30 = memref.load %arg1[%c30] : memref<41xf32, #tpu.memory_space<smem>>
    %c31 = arith.constant 31 : index
    %31 = memref.load %arg1[%c31] : memref<41xf32, #tpu.memory_space<smem>>
    %c32 = arith.constant 32 : index
    %32 = memref.load %arg1[%c32] : memref<41xf32, #tpu.memory_space<smem>>
    %c33 = arith.constant 33 : index
    %33 = memref.load %arg1[%c33] : memref<41xf32, #tpu.memory_space<smem>>
    %c34 = arith.constant 34 : index
    %34 = memref.load %arg1[%c34] : memref<41xf32, #tpu.memory_space<smem>>
    %c35 = arith.constant 35 : index
    %35 = memref.load %arg1[%c35] : memref<41xf32, #tpu.memory_space<smem>>
    %c36 = arith.constant 36 : index
    %36 = memref.load %arg1[%c36] : memref<41xf32, #tpu.memory_space<smem>>
    %c37 = arith.constant 37 : index
    %37 = memref.load %arg1[%c37] : memref<41xf32, #tpu.memory_space<smem>>
    %c38 = arith.constant 38 : index
    %38 = memref.load %arg1[%c38] : memref<41xf32, #tpu.memory_space<smem>>
    %c39 = arith.constant 39 : index
    %39 = memref.load %arg1[%c39] : memref<41xf32, #tpu.memory_space<smem>>
    %c40 = arith.constant 40 : index
    %40 = memref.load %arg1[%c40] : memref<41xf32, #tpu.memory_space<smem>>
    %c0_i32 = arith.constant 0 : i32
    %c8_i32 = arith.constant 8 : i32
    %41 = arith.muli %c0_i32, %c8_i32 : i32
    %42 = tpu.assume_multiple %41, 8 : i32
    %43 = arith.index_cast %42 : i32 to index
    %c0_0 = arith.constant 0 : index
    %44 = vector.load %arg2[%43, %c0_0] : memref<8x128xf32, #tpu.memory_space<vmem>>, vector<8x128xf32>
    %45 = arith.index_cast %42 : i32 to index
    %c0_1 = arith.constant 0 : index
    %46 = vector.load %arg3[%45, %c0_1] : memref<8x128xf32, #tpu.memory_space<vmem>>, vector<8x128xf32>
    %47 = vector.broadcast %40 : f32 to vector<8x128xf32>
    %48 = vector.broadcast %0 : f32 to vector<8x128xf32>
    %49 = arith.mulf %44, %48 : vector<8x128xf32>
    %50 = vector.broadcast %10 : f32 to vector<8x128xf32>
    %51 = arith.mulf %46, %50 : vector<8x128xf32>
    %52 = arith.addf %49, %51 : vector<8x128xf32>
    %53 = vector.broadcast %20 : f32 to vector<8x128xf32>
    %54 = arith.addf %52, %53 : vector<8x128xf32>
    %cst = arith.constant 0.000000e+00 : f32
    %55 = vector.broadcast %cst : f32 to vector<8x128xf32>
    %56 = arith.maximumf %54, %55 : vector<8x128xf32>
    %57 = vector.broadcast %30 : f32 to vector<8x128xf32>
    %58 = arith.mulf %56, %57 : vector<8x128xf32>
    %59 = arith.addf %47, %58 : vector<8x128xf32>
    %60 = vector.broadcast %1 : f32 to vector<8x128xf32>
    %61 = arith.mulf %44, %60 : vector<8x128xf32>
    %62 = vector.broadcast %11 : f32 to vector<8x128xf32>
    %63 = arith.mulf %46, %62 : vector<8x128xf32>
    %64 = arith.addf %61, %63 : vector<8x128xf32>
    %65 = vector.broadcast %21 : f32 to vector<8x128xf32>
    %66 = arith.addf %64, %65 : vector<8x128xf32>
    %cst_2 = arith.constant 0.000000e+00 : f32
    %67 = vector.broadcast %cst_2 : f32 to vector<8x128xf32>
    %68 = arith.maximumf %66, %67 : vector<8x128xf32>
    %69 = vector.broadcast %31 : f32 to vector<8x128xf32>
    %70 = arith.mulf %68, %69 : vector<8x128xf32>
    %71 = arith.addf %59, %70 : vector<8x128xf32>
    %72 = vector.broadcast %2 : f32 to vector<8x128xf32>
    %73 = arith.mulf %44, %72 : vector<8x128xf32>
    %74 = vector.broadcast %12 : f32 to vector<8x128xf32>
    %75 = arith.mulf %46, %74 : vector<8x128xf32>
    %76 = arith.addf %73, %75 : vector<8x128xf32>
    %77 = vector.broadcast %22 : f32 to vector<8x128xf32>
    %78 = arith.addf %76, %77 : vector<8x128xf32>
    %cst_3 = arith.constant 0.000000e+00 : f32
    %79 = vector.broadcast %cst_3 : f32 to vector<8x128xf32>
    %80 = arith.maximumf %78, %79 : vector<8x128xf32>
    %81 = vector.broadcast %32 : f32 to vector<8x128xf32>
    %82 = arith.mulf %80, %81 : vector<8x128xf32>
    %83 = arith.addf %71, %82 : vector<8x128xf32>
    %84 = vector.broadcast %3 : f32 to vector<8x128xf32>
    %85 = arith.mulf %44, %84 : vector<8x128xf32>
    %86 = vector.broadcast %13 : f32 to vector<8x128xf32>
    %87 = arith.mulf %46, %86 : vector<8x128xf32>
    %88 = arith.addf %85, %87 : vector<8x128xf32>
    %89 = vector.broadcast %23 : f32 to vector<8x128xf32>
    %90 = arith.addf %88, %89 : vector<8x128xf32>
    %cst_4 = arith.constant 0.000000e+00 : f32
    %91 = vector.broadcast %cst_4 : f32 to vector<8x128xf32>
    %92 = arith.maximumf %90, %91 : vector<8x128xf32>
    %93 = vector.broadcast %33 : f32 to vector<8x128xf32>
    %94 = arith.mulf %92, %93 : vector<8x128xf32>
    %95 = arith.addf %83, %94 : vector<8x128xf32>
    %96 = vector.broadcast %4 : f32 to vector<8x128xf32>
    %97 = arith.mulf %44, %96 : vector<8x128xf32>
    %98 = vector.broadcast %14 : f32 to vector<8x128xf32>
    %99 = arith.mulf %46, %98 : vector<8x128xf32>
    %100 = arith.addf %97, %99 : vector<8x128xf32>
    %101 = vector.broadcast %24 : f32 to vector<8x128xf32>
    %102 = arith.addf %100, %101 : vector<8x128xf32>
    %cst_5 = arith.constant 0.000000e+00 : f32
    %103 = vector.broadcast %cst_5 : f32 to vector<8x128xf32>
    %104 = arith.maximumf %102, %103 : vector<8x128xf32>
    %105 = vector.broadcast %34 : f32 to vector<8x128xf32>
    %106 = arith.mulf %104, %105 : vector<8x128xf32>
    %107 = arith.addf %95, %106 : vector<8x128xf32>
    %108 = vector.broadcast %5 : f32 to vector<8x128xf32>
    %109 = arith.mulf %44, %108 : vector<8x128xf32>
    %110 = vector.broadcast %15 : f32 to vector<8x128xf32>
    %111 = arith.mulf %46, %110 : vector<8x128xf32>
    %112 = arith.addf %109, %111 : vector<8x128xf32>
    %113 = vector.broadcast %25 : f32 to vector<8x128xf32>
    %114 = arith.addf %112, %113 : vector<8x128xf32>
    %cst_6 = arith.constant 0.000000e+00 : f32
    %115 = vector.broadcast %cst_6 : f32 to vector<8x128xf32>
    %116 = arith.maximumf %114, %115 : vector<8x128xf32>
    %117 = vector.broadcast %35 : f32 to vector<8x128xf32>
    %118 = arith.mulf %116, %117 : vector<8x128xf32>
    %119 = arith.addf %107, %118 : vector<8x128xf32>
    %120 = vector.broadcast %6 : f32 to vector<8x128xf32>
    %121 = arith.mulf %44, %120 : vector<8x128xf32>
    %122 = vector.broadcast %16 : f32 to vector<8x128xf32>
    %123 = arith.mulf %46, %122 : vector<8x128xf32>
    %124 = arith.addf %121, %123 : vector<8x128xf32>
    %125 = vector.broadcast %26 : f32 to vector<8x128xf32>
    %126 = arith.addf %124, %125 : vector<8x128xf32>
    %cst_7 = arith.constant 0.000000e+00 : f32
    %127 = vector.broadcast %cst_7 : f32 to vector<8x128xf32>
    %128 = arith.maximumf %126, %127 : vector<8x128xf32>
    %129 = vector.broadcast %36 : f32 to vector<8x128xf32>
    %130 = arith.mulf %128, %129 : vector<8x128xf32>
    %131 = arith.addf %119, %130 : vector<8x128xf32>
    %132 = vector.broadcast %7 : f32 to vector<8x128xf32>
    %133 = arith.mulf %44, %132 : vector<8x128xf32>
    %134 = vector.broadcast %17 : f32 to vector<8x128xf32>
    %135 = arith.mulf %46, %134 : vector<8x128xf32>
    %136 = arith.addf %133, %135 : vector<8x128xf32>
    %137 = vector.broadcast %27 : f32 to vector<8x128xf32>
    %138 = arith.addf %136, %137 : vector<8x128xf32>
    %cst_8 = arith.constant 0.000000e+00 : f32
    %139 = vector.broadcast %cst_8 : f32 to vector<8x128xf32>
    %140 = arith.maximumf %138, %139 : vector<8x128xf32>
    %141 = vector.broadcast %37 : f32 to vector<8x128xf32>
    %142 = arith.mulf %140, %141 : vector<8x128xf32>
    %143 = arith.addf %131, %142 : vector<8x128xf32>
    %144 = vector.broadcast %8 : f32 to vector<8x128xf32>
    %145 = arith.mulf %44, %144 : vector<8x128xf32>
    %146 = vector.broadcast %18 : f32 to vector<8x128xf32>
    %147 = arith.mulf %46, %146 : vector<8x128xf32>
    %148 = arith.addf %145, %147 : vector<8x128xf32>
    %149 = vector.broadcast %28 : f32 to vector<8x128xf32>
    %150 = arith.addf %148, %149 : vector<8x128xf32>
    %cst_9 = arith.constant 0.000000e+00 : f32
    %151 = vector.broadcast %cst_9 : f32 to vector<8x128xf32>
    %152 = arith.maximumf %150, %151 : vector<8x128xf32>
    %153 = vector.broadcast %38 : f32 to vector<8x128xf32>
    %154 = arith.mulf %152, %153 : vector<8x128xf32>
    %155 = arith.addf %143, %154 : vector<8x128xf32>
    %156 = vector.broadcast %9 : f32 to vector<8x128xf32>
    %157 = arith.mulf %44, %156 : vector<8x128xf32>
    %158 = vector.broadcast %19 : f32 to vector<8x128xf32>
    %159 = arith.mulf %46, %158 : vector<8x128xf32>
    %160 = arith.addf %157, %159 : vector<8x128xf32>
    %161 = vector.broadcast %29 : f32 to vector<8x128xf32>
    %162 = arith.addf %160, %161 : vector<8x128xf32>
    %cst_10 = arith.constant 0.000000e+00 : f32
    %163 = vector.broadcast %cst_10 : f32 to vector<8x128xf32>
    %164 = arith.maximumf %162, %163 : vector<8x128xf32>
    %165 = vector.broadcast %39 : f32 to vector<8x128xf32>
    %166 = arith.mulf %164, %165 : vector<8x128xf32>
    %167 = arith.addf %155, %166 : vector<8x128xf32>
    %168 = arith.index_cast %42 : i32 to index
    %c0_11 = arith.constant 0 : index
    %169 = vector.load %arg4[%168, %c0_11] : memref<8x128xf32, #tpu.memory_space<vmem>>, vector<8x128xf32>
    tpu.vector_store %arg4[%168, %c0_11], %167 {strides = array<i32>} : memref<8x128xf32, #tpu.memory_space<vmem>>, vector<8x128xf32>,
    %c1_i32 = arith.constant 1 : i32
    return
  }
  func.func @transform_0(%arg0: i32, %arg1: memref<41xf32, #tpu.memory_space<smem>>) -> (i32, i32) {
    %c0_i32 = arith.constant 0 : i32
    %c0_i32_0 = arith.constant 0 : i32
    return %arg0, %c0_i32 : i32, i32
  }
  func.func @transform_1(%arg0: i32, %arg1: memref<41xf32, #tpu.memory_space<smem>>) -> (i32, i32) {
    %c0_i32 = arith.constant 0 : i32
    %c0_i32_0 = arith.constant 0 : i32
    return %arg0, %c0_i32 : i32, i32
  }
  func.func @transform_2(%arg0: i32, %arg1: memref<41xf32, #tpu.memory_space<smem>>) -> (i32, i32) {
    %c0_i32 = arith.constant 0 : i32
    %c0_i32_0 = arith.constant 0 : i32
    return %arg0, %c0_i32 : i32, i32
  }
}

</mosaic_0001>

<bundles_post_ra>
// kernel: vehicle_model_forward.1
= control target key start
LH: loop header
LB: loop body
LE: loop exit
PB: predicated region body
PF: predicated region fallthrough
CT: control target
= control target key end

     0   :  { %s234_s15 = smov [#allocation3]   ;;  %s399_s0 = inlined_call_operand.vmem [shape: f32[41], index: 0, kind: input, shape index: {}]   ;;  %s400_s1 = inlined_call_operand.vmem [shape: f32[8,128], index: 1, kind: input, shape index: {}]   ;;  %s401_s2 = inlined_call_operand.vmem [shape: f32[8,128], index: 2, kind: input, shape index: {}]   ;;  %s402_s3 = inlined_call_operand.vmem [shape: f32[8,128], index: 3, kind: output, shape index: {}]  }
   0x1   :  { %s9_s14 = sshll.u32 %s399_s0, 4  ;;  %s10_s14 = int_to_ptr.vmem [resolvable:$true] %s9_s14 }
   0x2   :  { %12 = dma.vmem_to_smem %s10_s14, 16, %s234_s15, [#allocation2] }
   0x3   :  { %232 = dma.done.wait [#allocation2], 16 }
   0x4   :  { %233 = vsyncadd [#allocation2], 4294967280 }
   0x5   :  { %15 = sfence }
   0x6   :  { %s20_s16 = sld [smem:[#allocation3]]  ;;  %v293_v0 = vld [vmem:[%s400_s1] sm:$0xff] }
   0x7   :  { %s258_s17 = sld [smem:[#allocation3 + $0x1]]  ;;  %v298_v1 = vld [vmem:[%s401_s2] sm:$0xff] }
   0x8   :  { %s260_s18 = sld [smem:[#allocation3 + $0x2]] }
   0x9   :  { %s262_s19 = sld [smem:[#allocation3 + $0x3]] }
   0xa   :  { %s264_s20 = sld [smem:[#allocation3 + $0x4]] }
   0xb   :  { %s266_s21 = sld [smem:[#allocation3 + $0x5]] }
   0xc   :  { %s268_s22 = sld [smem:[#allocation3 + $0x6]]  ;;  %v64_v2 = vstv %s20_s16 }
   0xd   :  { %s270_s0 = sld [smem:[#allocation3 + $0x7]]  ;;  %v75_v4 = vstv %s258_s17  ;;  %v65_v6 = vmul.f32 %v64_v2, %v293_v0 }
   0xe   :  { %s272_s23 = sld [smem:[#allocation3 + $0x8]]  ;;  %v86_v8 = vstv %s260_s18  ;;  %v76_v10 = vmul.f32 %v75_v4, %v293_v0 }
   0xf   :  { %s274_s24 = sld [smem:[#allocation3 + $0x9]]  ;;  %v97_v12 = vstv %s262_s19  ;;  %v87_v16 = vmul.f32 %v86_v8, %v293_v0 }
  0x10   :  { %s188_s25 = sld [smem:[#allocation3 + $0xa]]  ;;  %v108_v13 = vstv %s264_s20  ;;  %v98_v20 = vmul.f32 %v97_v12, %v293_v0 }
  0x11   :  { %s189_s26 = sld [smem:[#allocation3 + $0xb]]  ;;  %v109_v21 = vmul.f32 %v108_v13, %v293_v0  ;;  %v119_v24 = vstv %s266_s21 }
  0x12   :  { %s276_s27 = sld [smem:[#allocation3 + $0xc]]  ;;  %v130_v28 = vstv %s268_s22  ;;  %v120_v33 = vmul.f32 %v119_v24, %v293_v0 }
  0x13   :  { %s278_s28 = sld [smem:[#allocation3 + $0xd]]  ;;  %v141_v29 = vstv %s270_s0  ;;  %v131_v38 = vmul.f32 %v130_v28, %v293_v0 }
  0x14   :  { %s280_s29 = sld [smem:[#allocation3 + $0xe]]  ;;  %v142_v39 = vmul.f32 %v141_v29, %v293_v0  ;;  %v152_v43 = vstv %s272_s23 }
  0x15   :  { %s282_s30 = sld [smem:[#allocation3 + $0xf]]  ;;  %v163_v51 = vstv %s274_s24  ;;  %v153_v58 = vmul.f32 %v152_v43, %v293_v0 }
  0x16   :  { %s284_s4 = sld [smem:[#allocation3 + $0x10]]  ;;  %v66_v3 = vstv %s188_s25  ;;  %v164_v4 = vmul.f32 %v163_v51, %v293_v0 }
  0x17   :  { %s286_s5 = sld [smem:[#allocation3 + $0x11]]  ;;  %v77_v5 = vstv %s189_s26  ;;  %v67_v7 = vmul.f32 %v66_v3, %v298_v1 }
  0x18   :  { %s288_s6 = sld [smem:[#allocation3 + $0x14]]  ;;  %v88_v9 = vstv %s276_s27  ;;  %v78_v11 = vmul.f32 %v77_v5, %v298_v1 }
  0x19   :  { %s300_s11 = sld [smem:[#allocation3 + $0x12]]  ;;  %v99_v14 = vstv %s278_s28  ;;  %v68_v15 = vadd.f32 %v67_v7, %v65_v6  ;;  %v89_v17 = vmul.f32 %v88_v9, %v298_v1 }
  0x1a   :  { %s302_s12 = sld [smem:[#allocation3 + $0x15]]  ;;  %v110_v18 = vstv %s280_s29  ;;  %v79_v22 = vadd.f32 %v78_v11, %v76_v10  ;;  %v100_v23 = vmul.f32 %v99_v14, %v298_v1 }
  0x1b   :  { %s305_s13 = sld [smem:[#allocation3 + $0x13]]  ;;  %v121_v25 = vstv %s282_s30  ;;  %v111_v27 = vmul.f32 %v110_v18, %v298_v1  ;;  %v90_v31 = vadd.f32 %v89_v17, %v87_v16 }
  0x1c   :  { %s309_s1 = sld [smem:[#allocation3 + $0x16]]  ;;  %v122_v34 = vmul.f32 %v121_v25, %v298_v1  ;;  %v132_v35 = vstv %s284_s4  ;;  %v101_v37 = vadd.f32 %v100_v23, %v98_v20 }
  0x1d   :  { %s313_s2 = sld [smem:[#allocation3 + $0x17]]  ;;  %v112_v41 = vadd.f32 %v111_v27, %v109_v21  ;;  %v143_v42 = vstv %s286_s5  ;;  %v133_v46 = vmul.f32 %v132_v35, %v298_v1 }
  0x1e   :  { %s319_s14 = sld [smem:[#allocation3 + $0x18]]  ;;  %v69_v19 = vstv %s288_s6  ;;  %v123_v50 = vadd.f32 %v122_v34, %v120_v33  ;;  %v144_v54 = vmul.f32 %v143_v42, %v298_v1 }
  0x1f   :  { %s322_s15 = sld [smem:[#allocation3 + $0x19]]  ;;  %v70_v30 = vadd.f32 %v69_v19, %v68_v15  ;;  %v154_v47 = vstv %s300_s11  ;;  %v134_v63 = vadd.f32 %v133_v46, %v131_v38 }
  0x20   :  { %s327_s16 = sld [smem:[#allocation3 + $0x1e]]  ;;  %v80_v26 = vstv %s302_s12  ;;  %v155_v59 = vmul.f32 %v154_v47, %v298_v1  ;;  %v145_v9 = vadd.f32 %v144_v54, %v142_v39 }
  0x21   :  { %s332_s17 = sld [smem:[#allocation3 + $0x1a]]  ;;  %v81_v36 = vadd.f32 %v80_v26, %v79_v22  ;;  %v71_v44 = vmax.f32 %v70_v30, 0.0  ;;  %v165_v55 = vstv %s305_s13 }
  0x22   :  { %s337_s18 = sld [smem:[#allocation3 + $0x1f]]  ;;  %v91_v32 = vstv %s309_s1  ;;  %v166_v5 = vmul.f32 %v165_v55, %v298_v1  ;;  %v156_v13 = vadd.f32 %v155_v59, %v153_v58 }
  0x23   :  { %s343_s19 = sld [smem:[#allocation3 + $0x1b]]  ;;  %v102_v40 = vstv %s313_s2  ;;  %v92_v45 = vadd.f32 %v91_v32, %v90_v31  ;;  %v82_v52 = vmax.f32 %v81_v36, 0.0 }
  0x24   :  { %s345_s20 = sld [smem:[#allocation3 + $0x20]]  ;;  %v113_v49 = vstv %s319_s14  ;;  %v103_v53 = vadd.f32 %v102_v40, %v101_v37  ;;  %v167_v18 = vadd.f32 %v166_v5, %v164_v4 }
  0x25   :  { %s351_s21 = sld [smem:[#allocation3 + $0x1c]]  ;;  %v124_v57 = vstv %s322_s15  ;;  %v93_v61 = vmax.f32 %v92_v45, 0.0  ;;  %v114_v62 = vadd.f32 %v113_v49, %v112_v41 }
  0x26   :  { %s355_s22 = sld [smem:[#allocation3 + $0x21]]  ;;  %v72_v48 = vstv %s327_s16  ;;  %v104_v7 = vmax.f32 %v103_v53, 0.0  ;;  %v125_v8 = vadd.f32 %v124_v57, %v123_v50 }
  0x27   :  { %s360_s0 = sld [smem:[#allocation3 + $0x22]]  ;;  %v73_v60 = vmul.f32 %v72_v48, %v71_v44  ;;  %v135_v3 = vstv %s332_s17  ;;  %v115_v16 = vmax.f32 %v114_v62, 0.0 }
  0x28   :  { %s364_s25 = sld [smem:[#allocation3 + $0x28]]  ;;  %v83_v56 = vstv %s337_s18  ;;  %v136_v0 = vadd.f32 %v135_v3, %v134_v63  ;;  %v126_v21 = vmax.f32 %v125_v8, 0.0 }
  0x29   :  { %s369_s26 = sld [smem:[#allocation3 + $0x1d]]  ;;  %v84_v6 = vmul.f32 %v83_v56, %v82_v52  ;;  %v146_v12 = vstv %s343_s19 }
  0x2a   :  { %s373_s23 = sld [smem:[#allocation3 + $0x23]]  ;;  %v94_v2 = vstv %s345_s20  ;;  %v147_v22 = vadd.f32 %v146_v12, %v145_v9  ;;  %v137_v27 = vmax.f32 %v136_v0, 0.0 }
  0x2b   :  { %s379_s24 = sld [smem:[#allocation3 + $0x24]]  ;;  %v95_v15 = vmul.f32 %v94_v2, %v93_v61  ;;  %v157_v17 = vstv %s351_s21 }
  0x2c   :  { %s385_s27 = sld [smem:[#allocation3 + $0x25]]  ;;  %v105_v11 = vstv %s355_s22  ;;  %v158_v28 = vadd.f32 %v157_v17, %v156_v13  ;;  %v148_v32 = vmax.f32 %v147_v22, 0.0 }
  0x2d   :  { %s216_s28 = sld [smem:[#allocation3 + $0x26]]  ;;  %v116_v1 = vstv %s360_s0  ;;  %v106_v20 = vmul.f32 %v105_v11, %v104_v7 }
  0x2e   :  { %v63_v10 = vstv %s364_s25  ;;  %s217_s29 = sld [smem:[#allocation3 + $0x27]]  ;;  %v117_v26 = vmul.f32 %v116_v1, %v115_v16  ;;  %v159_v37 = vmax.f32 %v158_v28, 0.0 }
  0x2f   :  { %v74_v14 = vadd.f32 %v73_v60, %v63_v10  ;;  %v168_v24 = vstv %s369_s26 }
  0x30   :  { %v127_v23 = vstv %s373_s23  ;;  %v169_v33 = vadd.f32 %v168_v24, %v167_v18 }
  0x31   :  { %v85_v19 = vadd.f32 %v84_v6, %v74_v14  ;;  %v138_v29 = vstv %s379_s24  ;;  %v128_v31 = vmul.f32 %v127_v23, %v126_v21 }
  0x32   :  { %v149_v34 = vstv %s385_s27  ;;  %v139_v36 = vmul.f32 %v138_v29, %v137_v27  ;;  %v170_v41 = vmax.f32 %v169_v33, 0.0 }
  0x33   :  { %v96_v25 = vadd.f32 %v95_v15, %v85_v19  ;;  %v160_v38 = vstv %s216_s28  ;;  %v150_v40 = vmul.f32 %v149_v34, %v148_v32 }
  0x34   :  { %v171_v42 = vstv %s217_s29  ;;  %v161_v44 = vmul.f32 %v160_v38, %v159_v37 }
  0x35   :  { %v107_v30 = vadd.f32 %v106_v20, %v96_v25  ;;  %v172_v46 = vmul.f32 %v171_v42, %v170_v41 }
  0x37   :  { %v118_v35 = vadd.f32 %v117_v26, %v107_v30 }
  0x39   :  { %v129_v39 = vadd.f32 %v128_v31, %v118_v35 }
  0x3b   :  { %v140_v43 = vadd.f32 %v139_v36, %v129_v39 }
  0x3d   :  { %v151_v45 = vadd.f32 %v150_v40, %v140_v43 }
  0x3f   :  { %v162_v47 = vadd.f32 %v161_v44, %v151_v45 }
  0x41   :  { %v173_v48 = vadd.f32 %v172_v46, %v162_v47 }
  0x43   :  { %174 = vst [vmem:[%s402_s3] sm:$0xff] %v173_v48 }

</bundles_post_ra>
